<compile_context>
chip_gen: v5e
topology: v5e:2x2
jax: 0.10.0
libtpu: 0.0.40
codegen_flags: <defaults>
</compile_context>

<pallas_src>
import functools

import jax
import jax.numpy as jnp
import numpy as np
from jax import lax
from jax.experimental import pallas as pl
from jax.experimental.pallas import tpu as pltpu

# ---- hyper-parameters of the dynamics (the module's implicit globals) --------
DT = 1e-3
TAU_S = 0.01
TAU_M = 0.02
TAU_D = 0.03
VTHR = 1.0
TREF = 5.0 * DT
LS = float(np.exp(-DT / TAU_S))
LM = float(np.exp(-DT / TAU_M))
LD = float(np.exp(-DT / TAU_D))

_NEG_BIG = -1e30  # finite "minus infinity" for masking padded softmax columns


def _round_up(x, m):
    return (x + m - 1) // m * m


def _mdl_rnn_kernel(spk_ref, winT_ref, wrT_ref, woutT_ref, y_ref,
                    I_ref, mem_ref, s_ref, r_ref, tlast_ref, rmax_ref,
                    *, t_chunk, num_outputs):
    """One (batch block, time chunk) grid step of the LIF forward pass.

    spk_ref  : (Tc, Bb, Np) bf16  rate-encoded spike chunk (pipelined over time)
    winT_ref : (Np, Hp)     bf16  Win.T  (zero padded, resident)
    wrT_ref  : (Hp, Hp)     f32   Wr.T   (zero padded, resident)
    woutT_ref: (Hp, Op)     f32   Wout.T (zero padded, resident)
    y_ref    : (Bb, Op)     f32   softmax output (resident across time chunks)
    *_ref    : (Bb, Hp)     f32   persistent LIF state scratch
    """
    tc = pl.program_id(1)
    n_tc = pl.num_programs(1)
    Bb, Hp = rmax_ref.shape

    # --- init state at the first time chunk of each batch block -------------
    @pl.when(tc == 0)
    def _init():
        zero = jnp.zeros((Bb, Hp), jnp.float32)
        I_ref[...] = zero
        mem_ref[...] = zero
        s_ref[...] = zero
        r_ref[...] = zero
        rmax_ref[...] = zero
        tlast_ref[...] = jnp.full((Bb, Hp), -1.0, jnp.float32)

    # --- (1) hoisted input projection for this chunk: bf16 x bf16 MXU dots,
    # f32 accumulation, issued off the serial recurrent critical path.
    winT = winT_ref[...]
    proj = [jnp.dot(spk_ref[k], winT, preferred_element_type=jnp.float32)
            for k in range(t_chunk)]                               # Tc x (Bb, Hp)

    # --- (2) serial LIF recursion over this chunk (short static loop; live
    # ranges are bounded by the time-chunk grid axis).
    wrT = wrT_ref[...]
    I = I_ref[...]
    mem = mem_ref[...]
    s = s_ref[...]
    r = r_ref[...]
    tlast = tlast_ref[...]
    rmax = rmax_ref[...]

    t_base = (tc * t_chunk).astype(jnp.float32) * DT               # dt * (chunk start)
    for k in range(t_chunk):
        ti = t_base + DT * k                                       # dt * i
        # I = ls * I + Win @ spk[i] + Wr @ r      (row-vector form)
        # TODO(synk): if the recurrent dot is the measured critical path at large
        # H, keep Wr.T RHS-stationary in the MXU (pltpu.matmul_push_rhs /
        # matmul_acc_lhs) or exploit Wr's rank-P structure (two skinny matmuls).
        I = LS * I + proj[k] + jnp.dot(r, wrT, preferred_element_type=jnp.float32)
        # mem = (dt*i > tlast + tref) * (lm*mem + (1-lm)*I) * (1 - s_prev)
        not_refractory = (ti > tlast + TREF).astype(jnp.float32)
        mem = not_refractory * (LM * mem + (1.0 - LM) * I) * (1.0 - s)
        # single synaptic filter: r = exp(-dt/tau_d) * r + dt/tau_d * s_prev
        r = LD * r + (DT / TAU_D) * s
        # s = spike_grad(mem - vthr)   (forward == heaviside)
        s = (mem - VTHR > 0.0).astype(jnp.float32)
        # tlast = tlast + (dt*i - tlast) * s
        tlast = tlast + (ti - tlast) * s
        # running max of the rate trace (r >= 0, so 0-init is exact and keeps
        # padded lanes finite for the output matmul).
        rmax = jnp.maximum(rmax, r)

    I_ref[...] = I
    mem_ref[...] = mem
    s_ref[...] = s
    r_ref[...] = r
    tlast_ref[...] = tlast
    rmax_ref[...] = rmax

    # --- (3) readout + masked softmax after the last time chunk --------------
    @pl.when(tc == n_tc - 1)
    def _readout():
        rout = jnp.dot(rmax, woutT_ref[...], preferred_element_type=jnp.float32)
        col = lax.broadcasted_iota(jnp.int32, rout.shape, 1)
        rout = jnp.where(col < num_outputs, rout, _NEG_BIG)        # mask pad cols
        m = jnp.max(rout, axis=-1, keepdims=True)
        e = jnp.exp(rout - m)
        denom = jnp.sum(e, axis=-1, keepdims=True)
        # approx reciprocal (EUP slot): rows sum to 1 only to ~1e-3 — fine for
        # inference; switch to exact divide if downstream needs exact normalization.
        y_ref[...] = e * pl.reciprocal(denom, approx=True)


@functools.partial(jax.jit, static_argnames=("batch", "num_outputs", "t_chunk"))
def mdl_rnn_forward(spk_pad, winT, wrT, woutT, *, batch, num_outputs, t_chunk=4):
    """spk_pad: (T, Bp, Np) bf16 {0,1}, already (8,128)-padded.
    winT=(N,H); wrT=(H,H); woutT=(H,O)  ->  (batch, num_outputs, 1) softmax output."""
    T, Bp, Np = spk_pad.shape
    N, H = winT.shape
    O = woutT.shape[1]
    assert Np % 128 == 0 and Bp % 8 == 0 and Np >= N

    Hp = _round_up(H, 128)
    Op = _round_up(O, 128)

    # Batch-parallel grid axis: at real batch sizes both v7x TensorCores get work;
    # at toy scale this degenerates to a single block.
    if Bp <= 128:
        Bb = Bp
    else:
        assert Bp % 128 == 0
        Bb = 128
    nb = Bp // Bb

    # Largest divisor of T not exceeding the requested time-chunk length.
    tch = max(1, min(t_chunk, T))
    while T % tch:
        tch -= 1
    n_tc = T // tch

    # Tiny padded weight copies.  Win goes to bf16 so the projection matmul runs
    # at native bf16 MXU rate (spikes are exactly {0,1} in bf16).
    winT_p = jnp.zeros((Np, Hp), jnp.float32).at[:N, :H].set(winT).astype(jnp.bfloat16)
    wrT_p = jnp.zeros((Hp, Hp), jnp.float32).at[:H, :H].set(wrT)
    woutT_p = jnp.zeros((Hp, Op), jnp.float32).at[:H, :O].set(woutT)

    kernel = functools.partial(_mdl_rnn_kernel, t_chunk=tch, num_outputs=num_outputs)

    y_p = pl.pallas_call(
        kernel,
        out_shape=jax.ShapeDtypeStruct((Bp, Op), jnp.float32),
        grid_spec=pltpu.PrefetchScalarGridSpec(
            num_scalar_prefetch=0,
            grid=(nb, n_tc),  # (batch blocks, time chunks)
            in_specs=[
                # spike chunk: pipelined HBM->VMEM over the trailing time axis
                pl.BlockSpec((tch, Bb, Np), lambda b, t: (t, b, 0)),
                # resident weights (constant block index across the grid)
                # TODO(synk): pipeline_mode=pl.Buffered(1) would halve their VMEM
                # footprint at large H; left at the default for compile safety.
                pl.BlockSpec((Np, Hp), lambda b, t: (0, 0)),
                pl.BlockSpec((Hp, Hp), lambda b, t: (0, 0)),
                pl.BlockSpec((Hp, Op), lambda b, t: (0, 0)),
            ],
            out_specs=pl.BlockSpec((Bb, Op), lambda b, t: (b, 0)),
            scratch_shapes=[pltpu.VMEM((Bb, Hp), jnp.float32) for _ in range(6)],
        ),
        compiler_params=pltpu.CompilerParams(
            dimension_semantics=("parallel", "arbitrary"),
            vmem_limit_bytes=32 * 1024 * 1024),
    )(spk_pad, winT_p, wrT_p, woutT_p)

    # match the torch output shape (batch, output, 1)
    return y_p[:batch, :num_outputs].reshape(batch, num_outputs, 1)


def mdl_rnn_reference(spk_in, winT, wrT, woutT):
    """Pure-JAX f32 mirror of the torch forward (for the correctness check)."""
    with jax.default_matmul_precision("float32"):
        T, B, N = spk_in.shape
        H = winT.shape[1]
        I = jnp.zeros((B, H), jnp.float32)
        mem = jnp.zeros((B, H), jnp.float32)
        s = jnp.zeros((B, H), jnp.float32)
        r = jnp.zeros((B, H), jnp.float32)
        tlast = jnp.full((B, H), -1.0, jnp.float32)
        rmax = jnp.zeros((B, H), jnp.float32)
        for i in range(T):
            I = LS * I + spk_in[i] @ winT + r @ wrT
            mem = (DT * i > tlast + TREF).astype(jnp.float32) * (LM * mem + (1 - LM) * I) * (1 - s)
            r = LD * r + (DT / TAU_D) * s
            s = (mem - VTHR > 0).astype(jnp.float32)
            tlast = tlast + (DT * i - tlast) * s
            rmax = jnp.maximum(rmax, r)
        rout = rmax @ woutT
        y = jax.nn.softmax(rout, axis=-1)
        return y.reshape(B, -1, 1)


if __name__ == "__main__":
    # Small, module-consistent shapes: input image (B, 1, 8, 8) -> 64 inputs.
    B, IMG = 2, 8
    input_shape = IMG * IMG          # 64
    hidden_shape = 32
    output_shape = 10
    P = 4
    time_steps = 8

    key = jax.random.PRNGKey(0)
    k_x, k_spk, k_win, k_wout, k_pin, k_pout, k_l = jax.random.split(key, 7)

    # Input image in [0, 1] (NCHW like torch), then flatten(1).
    x = jax.random.uniform(k_x, (B, 1, IMG, IMG), dtype=jnp.float32)
    x_flat = x.reshape(B, -1)

    Bp = _round_up(B, 8)
    Np = _round_up(input_shape, 128)

    # spikegen.rate: Bernoulli rate encoding, emitted DIRECTLY in the padded
    # (8,128)-dense bf16 layout (padded rates are 0 -> padded spikes are 0), so
    # the kernel's only large HBM stream is never copied a second time.
    p_pad = jnp.zeros((Bp, Np), jnp.float32).at[:B, :input_shape].set(
        jnp.clip(x_flat, 0.0, 1.0))
    spk_pad = jax.random.bernoulli(
        k_spk, p=p_pad, shape=(time_steps, Bp, Np)).astype(jnp.bfloat16)

    # Deterministic parameter init following the module's initialize() stds.
    # Win is scaled 3x here purely so the smoke test actually exercises the
    # spiking / refractory / rate-filter path (otherwise no neuron crosses vthr).
    Win = 3.0 * jax.random.normal(k_win, (hidden_shape, input_shape), jnp.float32) / np.sqrt(input_shape)
    Wout = jax.random.normal(k_wout, (output_shape, hidden_shape), jnp.float32) / np.sqrt(output_shape)
    pin = jax.random.normal(k_pin, (hidden_shape, P), jnp.float32) / np.sqrt(P)
    pout = jax.random.normal(k_pout, (hidden_shape, P), jnp.float32) / np.sqrt(P)
    l = jax.random.normal(k_l, (P,), jnp.float32) / np.sqrt(hidden_shape)

    # Wr = (l * pin) @ pout.T   (parameter glue, plain JAX).
    Wr = (l[None, :] * pin) @ pout.T            # (H, H)

    winT = jnp.asarray(Win.T)                   # (N, H)
    wrT = jnp.asarray(Wr.T)                     # (H, H)
    woutT = jnp.asarray(Wout.T)                 # (H, O)

    y = mdl_rnn_forward(spk_pad, winT, wrT, woutT,
                        batch=B, num_outputs=output_shape, t_chunk=4)
    y = jax.block_until_ready(y)

    # Reference mirrors the kernel numerics path: f32 recursion on the
    # bf16-rounded Win (the bf16 MXU operand is the review-suggested change).
    spk_real = spk_pad[:, :B, :input_shape].astype(jnp.float32)
    winT_q = winT.astype(jnp.bfloat16).astype(jnp.float32)
    y_ref = mdl_rnn_reference(spk_real, winT_q, wrT, woutT)

    # Tolerance covers the EUP approximate reciprocal in the softmax plus any
    # residual accumulation-order / threshold-crossing jitter.
    np.testing.assert_allclose(np.asarray(y), np.asarray(y_ref), rtol=0, atol=2e-2)
    assert y.shape == (B, output_shape, 1)
    np.testing.assert_allclose(np.asarray(y).sum(axis=1), 1.0, rtol=0, atol=5e-3)

    print("KERNEL_OK")
</pallas_src>

<mosaic_0001>
module attributes {stable_mosaic.version = 11 : i64} {
  func.func @_mdl_rnn_kernel(%arg0: i32, %arg1: i32, %arg2: memref<4x8x128xbf16, #tpu.memory_space<vmem>>, %arg3: memref<128x128xbf16, #tpu.memory_space<vmem>>, %arg4: memref<128x128xf32, #tpu.memory_space<vmem>>, %arg5: memref<128x128xf32, #tpu.memory_space<vmem>>, %arg6: memref<8x128xf32, #tpu.memory_space<vmem>>, %arg7: memref<8x128xf32, #tpu.memory_space<vmem>>, %arg8: memref<8x128xf32, #tpu.memory_space<vmem>>, %arg9: memref<8x128xf32, #tpu.memory_space<vmem>>, %arg10: memref<8x128xf32, #tpu.memory_space<vmem>>, %arg11: memref<8x128xf32, #tpu.memory_space<vmem>>, %arg12: memref<8x128xf32, #tpu.memory_space<vmem>>) attributes {dimension_semantics = [#tpu.dimension_semantics<parallel>, #tpu.dimension_semantics<arbitrary>], iteration_bounds = array<i64: 1, 2>, scalar_prefetch = 0 : i64, scratch_operands = 6 : i64, tpu.core_type = #tpu.core_type<tc>, window_params = [{transform_indices = @transform_0, window_bounds = array<i64: 4, 8, 128>}, {pipeline_mode = #tpu.pipeline_mode<synchronous>, transform_indices = @transform_1, window_bounds = array<i64: 128, 128>}, {pipeline_mode = #tpu.pipeline_mode<synchronous>, transform_indices = @transform_2, window_bounds = array<i64: 128, 128>}, {pipeline_mode = #tpu.pipeline_mode<synchronous>, transform_indices = @transform_3, window_bounds = array<i64: 128, 128>}, {transform_indices = @transform_4, window_bounds = array<i64: 8, 128>}]} {
    %c0_i32 = arith.constant 0 : i32
    %0 = arith.cmpi eq, %arg1, %c0_i32 : i32
    %1 = arith.extui %0 : i1 to i32
    %c0_i32_0 = arith.constant 0 : i32
    %2 = arith.cmpi ne, %1, %c0_i32_0 : i32
    scf.if %2 {
      %cst_86 = arith.constant 0.000000e+00 : f32
      %183 = vector.broadcast %cst_86 : f32 to vector<8x128xf32>
      %c0_87 = arith.constant 0 : index
      %c0_88 = arith.constant 0 : index
      %184 = vector.load %arg7[%c0_87, %c0_88] : memref<8x128xf32, #tpu.memory_space<vmem>>, vector<8x128xf32>
      tpu.vector_store %arg7[%c0_87, %c0_88], %183 {strides = array<i32>} : memref<8x128xf32, #tpu.memory_space<vmem>>, vector<8x128xf32>,
      %c0_89 = arith.constant 0 : index
      %c0_90 = arith.constant 0 : index
      %185 = vector.load %arg8[%c0_89, %c0_90] : memref<8x128xf32, #tpu.memory_space<vmem>>, vector<8x128xf32>
      tpu.vector_store %arg8[%c0_89, %c0_90], %183 {strides = array<i32>} : memref<8x128xf32, #tpu.memory_space<vmem>>, vector<8x128xf32>,
      %c0_91 = arith.constant 0 : index
      %c0_92 = arith.constant 0 : index
      %186 = vector.load %arg9[%c0_91, %c0_92] : memref<8x128xf32, #tpu.memory_space<vmem>>, vector<8x128xf32>
      tpu.vector_store %arg9[%c0_91, %c0_92], %183 {strides = array<i32>} : memref<8x128xf32, #tpu.memory_space<vmem>>, vector<8x128xf32>,
      %c0_93 = arith.constant 0 : index
      %c0_94 = arith.constant 0 : index
      %187 = vector.load %arg10[%c0_93, %c0_94] : memref<8x128xf32, #tpu.memory_space<vmem>>, vector<8x128xf32>
      tpu.vector_store %arg10[%c0_93, %c0_94], %183 {strides = array<i32>} : memref<8x128xf32, #tpu.memory_space<vmem>>, vector<8x128xf32>,
      %c0_95 = arith.constant 0 : index
      %c0_96 = arith.constant 0 : index
      %188 = vector.load %arg12[%c0_95, %c0_96] : memref<8x128xf32, #tpu.memory_space<vmem>>, vector<8x128xf32>
      tpu.vector_store %arg12[%c0_95, %c0_96], %183 {strides = array<i32>} : memref<8x128xf32, #tpu.memory_space<vmem>>, vector<8x128xf32>,
      %cst_97 = arith.constant -1.000000e+00 : f32
      %189 = vector.broadcast %cst_97 : f32 to vector<8x128xf32>
      %c0_98 = arith.constant 0 : index
      %c0_99 = arith.constant 0 : index
      %190 = vector.load %arg11[%c0_98, %c0_99] : memref<8x128xf32, #tpu.memory_space<vmem>>, vector<8x128xf32>
      tpu.vector_store %arg11[%c0_98, %c0_99], %189 {strides = array<i32>} : memref<8x128xf32, #tpu.memory_space<vmem>>, vector<8x128xf32>,
    } else {
    }
    %c0 = arith.constant 0 : index
    %c0_1 = arith.constant 0 : index
    %3 = vector.load %arg3[%c0, %c0_1] : memref<128x128xbf16, #tpu.memory_space<vmem>>, vector<128x128xbf16>
    %c0_2 = arith.constant 0 : index
    %c0_3 = arith.constant 0 : index
    %c0_4 = arith.constant 0 : index
    %4 = vector.load %arg2[%c0_2, %c0_3, %c0_4] : memref<4x8x128xbf16, #tpu.memory_space<vmem>>, vector<1x8x128xbf16>
    %5 = vector.shape_cast %4 : vector<1x8x128xbf16> to vector<8x128xbf16>
    %cst = arith.constant dense<0.000000e+00> : vector<8x128xf32>
    %6 = tpu.matmul %5, %3, %cst {dimension_numbers = #tpu.dot_dimension_numbers<[1], [0], [0], [1], [0, 0, 1, 1], [], []>} : vector<8x128xbf16>, vector<128x128xbf16>, vector<8x128xf32> -> vector<8x128xf32>
    %c1 = arith.constant 1 : index
    %c0_5 = arith.constant 0 : index
    %c0_6 = arith.constant 0 : index
    %7 = vector.load %arg2[%c1, %c0_5, %c0_6] : memref<4x8x128xbf16, #tpu.memory_space<vmem>>, vector<1x8x128xbf16>
    %8 = vector.shape_cast %7 : vector<1x8x128xbf16> to vector<8x128xbf16>
    %cst_7 = arith.constant dense<0.000000e+00> : vector<8x128xf32>
    %9 = tpu.matmul %8, %3, %cst_7 {dimension_numbers = #tpu.dot_dimension_numbers<[1], [0], [0], [1], [0, 0, 1, 1], [], []>} : vector<8x128xbf16>, vector<128x128xbf16>, vector<8x128xf32> -> vector<8x128xf32>
    %c2 = arith.constant 2 : index
    %c0_8 = arith.constant 0 : index
    %c0_9 = arith.constant 0 : index
    %10 = vector.load %arg2[%c2, %c0_8, %c0_9] : memref<4x8x128xbf16, #tpu.memory_space<vmem>>, vector<1x8x128xbf16>
    %11 = vector.shape_cast %10 : vector<1x8x128xbf16> to vector<8x128xbf16>
    %cst_10 = arith.constant dense<0.000000e+00> : vector<8x128xf32>
    %12 = tpu.matmul %11, %3, %cst_10 {dimension_numbers = #tpu.dot_dimension_numbers<[1], [0], [0], [1], [0, 0, 1, 1], [], []>} : vector<8x128xbf16>, vector<128x128xbf16>, vector<8x128xf32> -> vector<8x128xf32>
    %c3 = arith.constant 3 : index
    %c0_11 = arith.constant 0 : index
    %c0_12 = arith.constant 0 : index
    %13 = vector.load %arg2[%c3, %c0_11, %c0_12] : memref<4x8x128xbf16, #tpu.memory_space<vmem>>, vector<1x8x128xbf16>
    %14 = vector.shape_cast %13 : vector<1x8x128xbf16> to vector<8x128xbf16>
    %cst_13 = arith.constant dense<0.000000e+00> : vector<8x128xf32>
    %15 = tpu.matmul %14, %3, %cst_13 {dimension_numbers = #tpu.dot_dimension_numbers<[1], [0], [0], [1], [0, 0, 1, 1], [], []>} : vector<8x128xbf16>, vector<128x128xbf16>, vector<8x128xf32> -> vector<8x128xf32>
    %c0_14 = arith.constant 0 : index
    %c0_15 = arith.constant 0 : index
    %16 = vector.load %arg4[%c0_14, %c0_15] : memref<128x128xf32, #tpu.memory_space<vmem>>, vector<128x128xf32>
    %c0_16 = arith.constant 0 : index
    %c0_17 = arith.constant 0 : index
    %17 = vector.load %arg7[%c0_16, %c0_17] : memref<8x128xf32, #tpu.memory_space<vmem>>, vector<8x128xf32>
    %c0_18 = arith.constant 0 : index
    %c0_19 = arith.constant 0 : index
    %18 = vector.load %arg8[%c0_18, %c0_19] : memref<8x128xf32, #tpu.memory_space<vmem>>, vector<8x128xf32>
    %c0_20 = arith.constant 0 : index
    %c0_21 = arith.constant 0 : index
    %19 = vector.load %arg9[%c0_20, %c0_21] : memref<8x128xf32, #tpu.memory_space<vmem>>, vector<8x128xf32>
    %c0_22 = arith.constant 0 : index
    %c0_23 = arith.constant 0 : index
    %20 = vector.load %arg10[%c0_22, %c0_23] : memref<8x128xf32, #tpu.memory_space<vmem>>, vector<8x128xf32>
    %c0_24 = arith.constant 0 : index
    %c0_25 = arith.constant 0 : index
    %21 = vector.load %arg11[%c0_24, %c0_25] : memref<8x128xf32, #tpu.memory_space<vmem>>, vector<8x128xf32>
    %c0_26 = arith.constant 0 : index
    %c0_27 = arith.constant 0 : index
    %22 = vector.load %arg12[%c0_26, %c0_27] : memref<8x128xf32, #tpu.memory_space<vmem>>, vector<8x128xf32>
    %c4_i32 = arith.constant 4 : i32
    %23 = arith.muli %arg1, %c4_i32 : i32
    %24 = arith.sitofp %23 : i32 to f32
    %cst_28 = arith.constant 1.000000e-03 : f32
    %25 = arith.mulf %24, %cst_28 : f32
    %cst_29 = arith.constant 0.000000e+00 : f32
    %26 = arith.addf %25, %cst_29 : f32
    %cst_30 = arith.constant 0.904837429 : f32
    %27 = vector.broadcast %cst_30 : f32 to vector<8x128xf32>
    %28 = arith.mulf %27, %17 : vector<8x128xf32>
    %29 = arith.addf %28, %6 : vector<8x128xf32>
    %cst_31 = arith.constant dense<0.000000e+00> : vector<8x128xf32>
    %30 = tpu.matmul %20, %16, %cst_31 {dimension_numbers = #tpu.dot_dimension_numbers<[1], [0], [0], [1], [0, 0, 1, 1], [], []>} : vector<8x128xf32>, vector<128x128xf32>, vector<8x128xf32> -> vector<8x128xf32>
    %31 = arith.addf %29, %30 : vector<8x128xf32>
    %cst_32 = arith.constant 5.000000e-03 : f32
    %32 = vector.broadcast %cst_32 : f32 to vector<8x128xf32>
    %33 = arith.addf %21, %32 : vector<8x128xf32>
    %34 = vector.broadcast %26 : f32 to vector<8x128xf32>
    %35 = arith.cmpf ogt, %34, %33 : vector<8x128xf32>
    %36 = arith.extui %35 : vector<8x128xi1> to vector<8x128xi32>
    %37 = arith.sitofp %36 : vector<8x128xi32> to vector<8x128xf32>
    %cst_33 = arith.constant 0.951229453 : f32
    %38 = vector.broadcast %cst_33 : f32 to vector<8x128xf32>
    %39 = arith.mulf %38, %18 : vector<8x128xf32>
    %cst_34 = arith.constant 0.0487705767 : f32
    %40 = vector.broadcast %cst_34 : f32 to vector<8x128xf32>
    %41 = arith.mulf %40, %31 : vector<8x128xf32>
    %42 = arith.addf %39, %41 : vector<8x128xf32>
    %43 = arith.mulf %37, %42 : vector<8x128xf32>
    %cst_35 = arith.constant 1.000000e+00 : f32
    %44 = vector.broadcast %cst_35 : f32 to vector<8x128xf32>
    %45 = arith.subf %44, %19 : vector<8x128xf32>
    %46 = arith.mulf %43, %45 : vector<8x128xf32>
    %cst_36 = arith.constant 0.967216074 : f32
    %47 = vector.broadcast %cst_36 : f32 to vector<8x128xf32>
    %48 = arith.mulf %47, %20 : vector<8x128xf32>
    %cst_37 = arith.constant 0.0333333351 : f32
    %49 = vector.broadcast %cst_37 : f32 to vector<8x128xf32>
    %50 = arith.mulf %49, %19 : vector<8x128xf32>
    %51 = arith.addf %48, %50 : vector<8x128xf32>
    %cst_38 = arith.constant 1.000000e+00 : f32
    %52 = vector.broadcast %cst_38 : f32 to vector<8x128xf32>
    %53 = arith.subf %46, %52 : vector<8x128xf32>
    %cst_39 = arith.constant 0.000000e+00 : f32
    %54 = vector.broadcast %cst_39 : f32 to vector<8x128xf32>
    %55 = arith.cmpf ogt, %53, %54 : vector<8x128xf32>
    %56 = arith.extui %55 : vector<8x128xi1> to vector<8x128xi32>
    %57 = arith.sitofp %56 : vector<8x128xi32> to vector<8x128xf32>
    %58 = vector.broadcast %26 : f32 to vector<8x128xf32>
    %59 = arith.subf %58, %21 : vector<8x128xf32>
    %60 = arith.mulf %59, %57 : vector<8x128xf32>
    %61 = arith.addf %21, %60 : vector<8x128xf32>
    %62 = arith.maximumf %22, %51 : vector<8x128xf32>
    %cst_40 = arith.constant 1.000000e-03 : f32
    %63 = arith.addf %25, %cst_40 : f32
    %cst_41 = arith.constant 0.904837429 : f32
    %64 = vector.broadcast %cst_41 : f32 to vector<8x128xf32>
    %65 = arith.mulf %64, %31 : vector<8x128xf32>
    %66 = arith.addf %65, %9 : vector<8x128xf32>
    %cst_42 = arith.constant dense<0.000000e+00> : vector<8x128xf32>
    %67 = tpu.matmul %51, %16, %cst_42 {dimension_numbers = #tpu.dot_dimension_numbers<[1], [0], [0], [1], [0, 0, 1, 1], [], []>} : vector<8x128xf32>, vector<128x128xf32>, vector<8x128xf32> -> vector<8x128xf32>
    %68 = arith.addf %66, %67 : vector<8x128xf32>
    %cst_43 = arith.constant 5.000000e-03 : f32
    %69 = vector.broadcast %cst_43 : f32 to vector<8x128xf32>
    %70 = arith.addf %61, %69 : vector<8x128xf32>
    %71 = vector.broadcast %63 : f32 to vector<8x128xf32>
    %72 = arith.cmpf ogt, %71, %70 : vector<8x128xf32>
    %73 = arith.extui %72 : vector<8x128xi1> to vector<8x128xi32>
    %74 = arith.sitofp %73 : vector<8x128xi32> to vector<8x128xf32>
    %cst_44 = arith.constant 0.951229453 : f32
    %75 = vector.broadcast %cst_44 : f32 to vector<8x128xf32>
    %76 = arith.mulf %75, %46 : vector<8x128xf32>
    %cst_45 = arith.constant 0.0487705767 : f32
    %77 = vector.broadcast %cst_45 : f32 to vector<8x128xf32>
    %78 = arith.mulf %77, %68 : vector<8x128xf32>
    %79 = arith.addf %76, %78 : vector<8x128xf32>
    %80 = arith.mulf %74, %79 : vector<8x128xf32>
    %cst_46 = arith.constant 1.000000e+00 : f32
    %81 = vector.broadcast %cst_46 : f32 to vector<8x128xf32>
    %82 = arith.subf %81, %57 : vector<8x128xf32>
    %83 = arith.mulf %80, %82 : vector<8x128xf32>
    %cst_47 = arith.constant 0.967216074 : f32
    %84 = vector.broadcast %cst_47 : f32 to vector<8x128xf32>
    %85 = arith.mulf %84, %51 : vector<8x128xf32>
    %cst_48 = arith.constant 0.0333333351 : f32
    %86 = vector.broadcast %cst_48 : f32 to vector<8x128xf32>
    %87 = arith.mulf %86, %57 : vector<8x128xf32>
    %88 = arith.addf %85, %87 : vector<8x128xf32>
    %cst_49 = arith.constant 1.000000e+00 : f32
    %89 = vector.broadcast %cst_49 : f32 to vector<8x128xf32>
    %90 = arith.subf %83, %89 : vector<8x128xf32>
    %cst_50 = arith.constant 0.000000e+00 : f32
    %91 = vector.broadcast %cst_50 : f32 to vector<8x128xf32>
    %92 = arith.cmpf ogt, %90, %91 : vector<8x128xf32>
    %93 = arith.extui %92 : vector<8x128xi1> to vector<8x128xi32>
    %94 = arith.sitofp %93 : vector<8x128xi32> to vector<8x128xf32>
    %95 = vector.broadcast %63 : f32 to vector<8x128xf32>
    %96 = arith.subf %95, %61 : vector<8x128xf32>
    %97 = arith.mulf %96, %94 : vector<8x128xf32>
    %98 = arith.addf %61, %97 : vector<8x128xf32>
    %99 = arith.maximumf %62, %88 : vector<8x128xf32>
    %cst_51 = arith.constant 2.000000e-03 : f32
    %100 = arith.addf %25, %cst_51 : f32
    %cst_52 = arith.constant 0.904837429 : f32
    %101 = vector.broadcast %cst_52 : f32 to vector<8x128xf32>
    %102 = arith.mulf %101, %68 : vector<8x128xf32>
    %103 = arith.addf %102, %12 : vector<8x128xf32>
    %cst_53 = arith.constant dense<0.000000e+00> : vector<8x128xf32>
    %104 = tpu.matmul %88, %16, %cst_53 {dimension_numbers = #tpu.dot_dimension_numbers<[1], [0], [0], [1], [0, 0, 1, 1], [], []>} : vector<8x128xf32>, vector<128x128xf32>, vector<8x128xf32> -> vector<8x128xf32>
    %105 = arith.addf %103, %104 : vector<8x128xf32>
    %cst_54 = arith.constant 5.000000e-03 : f32
    %106 = vector.broadcast %cst_54 : f32 to vector<8x128xf32>
    %107 = arith.addf %98, %106 : vector<8x128xf32>
    %108 = vector.broadcast %100 : f32 to vector<8x128xf32>
    %109 = arith.cmpf ogt, %108, %107 : vector<8x128xf32>
    %110 = arith.extui %109 : vector<8x128xi1> to vector<8x128xi32>
    %111 = arith.sitofp %110 : vector<8x128xi32> to vector<8x128xf32>
    %cst_55 = arith.constant 0.951229453 : f32
    %112 = vector.broadcast %cst_55 : f32 to vector<8x128xf32>
    %113 = arith.mulf %112, %83 : vector<8x128xf32>
    %cst_56 = arith.constant 0.0487705767 : f32
    %114 = vector.broadcast %cst_56 : f32 to vector<8x128xf32>
    %115 = arith.mulf %114, %105 : vector<8x128xf32>
    %116 = arith.addf %113, %115 : vector<8x128xf32>
    %117 = arith.mulf %111, %116 : vector<8x128xf32>
    %cst_57 = arith.constant 1.000000e+00 : f32
    %118 = vector.broadcast %cst_57 : f32 to vector<8x128xf32>
    %119 = arith.subf %118, %94 : vector<8x128xf32>
    %120 = arith.mulf %117, %119 : vector<8x128xf32>
    %cst_58 = arith.constant 0.967216074 : f32
    %121 = vector.broadcast %cst_58 : f32 to vector<8x128xf32>
    %122 = arith.mulf %121, %88 : vector<8x128xf32>
    %cst_59 = arith.constant 0.0333333351 : f32
    %123 = vector.broadcast %cst_59 : f32 to vector<8x128xf32>
    %124 = arith.mulf %123, %94 : vector<8x128xf32>
    %125 = arith.addf %122, %124 : vector<8x128xf32>
    %cst_60 = arith.constant 1.000000e+00 : f32
    %126 = vector.broadcast %cst_60 : f32 to vector<8x128xf32>
    %127 = arith.subf %120, %126 : vector<8x128xf32>
    %cst_61 = arith.constant 0.000000e+00 : f32
    %128 = vector.broadcast %cst_61 : f32 to vector<8x128xf32>
    %129 = arith.cmpf ogt, %127, %128 : vector<8x128xf32>
    %130 = arith.extui %129 : vector<8x128xi1> to vector<8x128xi32>
    %131 = arith.sitofp %130 : vector<8x128xi32> to vector<8x128xf32>
    %132 = vector.broadcast %100 : f32 to vector<8x128xf32>
    %133 = arith.subf %132, %98 : vector<8x128xf32>
    %134 = arith.mulf %133, %131 : vector<8x128xf32>
    %135 = arith.addf %98, %134 : vector<8x128xf32>
    %136 = arith.maximumf %99, %125 : vector<8x128xf32>
    %cst_62 = arith.constant 3.000000e-03 : f32
    %137 = arith.addf %25, %cst_62 : f32
    %cst_63 = arith.constant 0.904837429 : f32
    %138 = vector.broadcast %cst_63 : f32 to vector<8x128xf32>
    %139 = arith.mulf %138, %105 : vector<8x128xf32>
    %140 = arith.addf %139, %15 : vector<8x128xf32>
    %cst_64 = arith.constant dense<0.000000e+00> : vector<8x128xf32>
    %141 = tpu.matmul %125, %16, %cst_64 {dimension_numbers = #tpu.dot_dimension_numbers<[1], [0], [0], [1], [0, 0, 1, 1], [], []>} : vector<8x128xf32>, vector<128x128xf32>, vector<8x128xf32> -> vector<8x128xf32>
    %142 = arith.addf %140, %141 : vector<8x128xf32>
    %cst_65 = arith.constant 5.000000e-03 : f32
    %143 = vector.broadcast %cst_65 : f32 to vector<8x128xf32>
    %144 = arith.addf %135, %143 : vector<8x128xf32>
    %145 = vector.broadcast %137 : f32 to vector<8x128xf32>
    %146 = arith.cmpf ogt, %145, %144 : vector<8x128xf32>
    %147 = arith.extui %146 : vector<8x128xi1> to vector<8x128xi32>
    %148 = arith.sitofp %147 : vector<8x128xi32> to vector<8x128xf32>
    %cst_66 = arith.constant 0.951229453 : f32
    %149 = vector.broadcast %cst_66 : f32 to vector<8x128xf32>
    %150 = arith.mulf %149, %120 : vector<8x128xf32>
    %cst_67 = arith.constant 0.0487705767 : f32
    %151 = vector.broadcast %cst_67 : f32 to vector<8x128xf32>
    %152 = arith.mulf %151, %142 : vector<8x128xf32>
    %153 = arith.addf %150, %152 : vector<8x128xf32>
    %154 = arith.mulf %148, %153 : vector<8x128xf32>
    %cst_68 = arith.constant 1.000000e+00 : f32
    %155 = vector.broadcast %cst_68 : f32 to vector<8x128xf32>
    %156 = arith.subf %155, %131 : vector<8x128xf32>
    %157 = arith.mulf %154, %156 : vector<8x128xf32>
    %cst_69 = arith.constant 0.967216074 : f32
    %158 = vector.broadcast %cst_69 : f32 to vector<8x128xf32>
    %159 = arith.mulf %158, %125 : vector<8x128xf32>
    %cst_70 = arith.constant 0.0333333351 : f32
    %160 = vector.broadcast %cst_70 : f32 to vector<8x128xf32>
    %161 = arith.mulf %160, %131 : vector<8x128xf32>
    %162 = arith.addf %159, %161 : vector<8x128xf32>
    %cst_71 = arith.constant 1.000000e+00 : f32
    %163 = vector.broadcast %cst_71 : f32 to vector<8x128xf32>
    %164 = arith.subf %157, %163 : vector<8x128xf32>
    %cst_72 = arith.constant 0.000000e+00 : f32
    %165 = vector.broadcast %cst_72 : f32 to vector<8x128xf32>
    %166 = arith.cmpf ogt, %164, %165 : vector<8x128xf32>
    %167 = arith.extui %166 : vector<8x128xi1> to vector<8x128xi32>
    %168 = arith.sitofp %167 : vector<8x128xi32> to vector<8x128xf32>
    %169 = vector.broadcast %137 : f32 to vector<8x128xf32>
    %170 = arith.subf %169, %135 : vector<8x128xf32>
    %171 = arith.mulf %170, %168 : vector<8x128xf32>
    %172 = arith.addf %135, %171 : vector<8x128xf32>
    %173 = arith.maximumf %136, %162 : vector<8x128xf32>
    %c0_73 = arith.constant 0 : index
    %c0_74 = arith.constant 0 : index
    %174 = vector.load %arg7[%c0_73, %c0_74] : memref<8x128xf32, #tpu.memory_space<vmem>>, vector<8x128xf32>
    tpu.vector_store %arg7[%c0_73, %c0_74], %142 {strides = array<i32>} : memref<8x128xf32, #tpu.memory_space<vmem>>, vector<8x128xf32>,
    %c0_75 = arith.constant 0 : index
    %c0_76 = arith.constant 0 : index
    %175 = vector.load %arg8[%c0_75, %c0_76] : memref<8x128xf32, #tpu.memory_space<vmem>>, vector<8x128xf32>
    tpu.vector_store %arg8[%c0_75, %c0_76], %157 {strides = array<i32>} : memref<8x128xf32, #tpu.memory_space<vmem>>, vector<8x128xf32>,
    %c0_77 = arith.constant 0 : index
    %c0_78 = arith.constant 0 : index
    %176 = vector.load %arg9[%c0_77, %c0_78] : memref<8x128xf32, #tpu.memory_space<vmem>>, vector<8x128xf32>
    tpu.vector_store %arg9[%c0_77, %c0_78], %168 {strides = array<i32>} : memref<8x128xf32, #tpu.memory_space<vmem>>, vector<8x128xf32>,
    %c0_79 = arith.constant 0 : index
    %c0_80 = arith.constant 0 : index
    %177 = vector.load %arg10[%c0_79, %c0_80] : memref<8x128xf32, #tpu.memory_space<vmem>>, vector<8x128xf32>
    tpu.vector_store %arg10[%c0_79, %c0_80], %162 {strides = array<i32>} : memref<8x128xf32, #tpu.memory_space<vmem>>, vector<8x128xf32>,
    %c0_81 = arith.constant 0 : index
    %c0_82 = arith.constant 0 : index
    %178 = vector.load %arg11[%c0_81, %c0_82] : memref<8x128xf32, #tpu.memory_space<vmem>>, vector<8x128xf32>
    tpu.vector_store %arg11[%c0_81, %c0_82], %172 {strides = array<i32>} : memref<8x128xf32, #tpu.memory_space<vmem>>, vector<8x128xf32>,
    %c0_83 = arith.constant 0 : index
    %c0_84 = arith.constant 0 : index
    %179 = vector.load %arg12[%c0_83, %c0_84] : memref<8x128xf32, #tpu.memory_space<vmem>>, vector<8x128xf32>
    tpu.vector_store %arg12[%c0_83, %c0_84], %173 {strides = array<i32>} : memref<8x128xf32, #tpu.memory_space<vmem>>, vector<8x128xf32>,
    %c1_i32 = arith.constant 1 : i32
    %180 = arith.cmpi eq, %arg1, %c1_i32 : i32
    %181 = arith.extui %180 : i1 to i32
    %c0_i32_85 = arith.constant 0 : i32
    %182 = arith.cmpi ne, %181, %c0_i32_85 : i32
    scf.if %182 {
      %c0_86 = arith.constant 0 : index
      %c0_87 = arith.constant 0 : index
      %183 = vector.load %arg5[%c0_86, %c0_87] : memref<128x128xf32, #tpu.memory_space<vmem>>, vector<128x128xf32>
      %cst_88 = arith.constant dense<0.000000e+00> : vector<8x128xf32>
      %184 = tpu.matmul %173, %183, %cst_88 {dimension_numbers = #tpu.dot_dimension_numbers<[1], [0], [0], [1], [0, 0, 1, 1], [], []>} : vector<8x128xf32>, vector<128x128xf32>, vector<8x128xf32> -> vector<8x128xf32>
      %185 = tpu.iota {dimensions = array<i32: 1>} : vector<8x128xi32>
      %c10_i32 = arith.constant 10 : i32
      %186 = vector.broadcast %c10_i32 : i32 to vector<8x128xi32>
      %187 = arith.cmpi slt, %185, %186 : vector<8x128xi32>
      %cst_89 = arith.constant -1.000000e+30 : f32
      %188 = vector.broadcast %cst_89 : f32 to vector<8x128xf32>
      %189 = arith.select %187, %184, %188 : vector<8x128xi1>, vector<8x128xf32>
      %cst_90 = arith.constant dense<0xFF800000> : vector<8xf32>
      %190 = vector.multi_reduction <maximumf>, %189, %cst_90 [1] : vector<8x128xf32> to vector<8xf32>
      %191 = vector.shape_cast %190 : vector<8xf32> to vector<8x1xf32>
      %192 = vector.broadcast %191 : vector<8x1xf32> to vector<8x128xf32>
      %193 = arith.subf %189, %192 : vector<8x128xf32>
      %194 = math.exp %193 : vector<8x128xf32>
      %cst_91 = arith.constant dense<0.000000e+00> : vector<8xf32>
      %195 = vector.multi_reduction <add>, %194, %cst_91 [1] : vector<8x128xf32> to vector<8xf32>
      %196 = vector.shape_cast %195 : vector<8xf32> to vector<8x1xf32>
      %197 = tpu.reciprocal %196 {approx = true} : vector<8x1xf32> -> vector<8x1xf32>
      %198 = vector.broadcast %197 : vector<8x1xf32> to vector<8x128xf32>
      %199 = arith.mulf %194, %198 : vector<8x128xf32>
      %c0_92 = arith.constant 0 : index
      %c0_93 = arith.constant 0 : index
      %200 = vector.load %arg6[%c0_92, %c0_93] : memref<8x128xf32, #tpu.memory_space<vmem>>, vector<8x128xf32>
      tpu.vector_store %arg6[%c0_92, %c0_93], %199 {strides = array<i32>} : memref<8x128xf32, #tpu.memory_space<vmem>>, vector<8x128xf32>,
    } else {
    }
    return
  }
  func.func @transform_0(%arg0: i32, %arg1: i32) -> (i32, i32, i32) {
    %c0_i32 = arith.constant 0 : i32
    %c0_i32_0 = arith.constant 0 : i32
    return %arg1, %arg0, %c0_i32 : i32, i32, i32
  }
  func.func @transform_1(%arg0: i32, %arg1: i32) -> (i32, i32) {
    %c0_i32 = arith.constant 0 : i32
    %c0_i32_0 = arith.constant 0 : i32
    %c0_i32_1 = arith.constant 0 : i32
    return %c0_i32, %c0_i32_0 : i32, i32
  }
  func.func @transform_2(%arg0: i32, %arg1: i32) -> (i32, i32) {
    %c0_i32 = arith.constant 0 : i32
    %c0_i32_0 = arith.constant 0 : i32
    %c0_i32_1 = arith.constant 0 : i32
    return %c0_i32, %c0_i32_0 : i32, i32
  }
  func.func @transform_3(%arg0: i32, %arg1: i32) -> (i32, i32) {
    %c0_i32 = arith.constant 0 : i32
    %c0_i32_0 = arith.constant 0 : i32
    %c0_i32_1 = arith.constant 0 : i32
    return %c0_i32, %c0_i32_0 : i32, i32
  }
  func.func @transform_4(%arg0: i32, %arg1: i32) -> (i32, i32) {
    %c0_i32 = arith.constant 0 : i32
    %c0_i32_0 = arith.constant 0 : i32
    return %arg0, %c0_i32 : i32, i32
  }
}

</mosaic_0001>

<bundles_post_ra>
// kernel: mdl_rnn_forward.1
= control target key start
LH: loop header
LB: loop body
LE: loop exit
PB: predicated region body
PF: predicated region fallthrough
CT: control target
= control target key end

     0   :  { %s835_s15 = smov 0   ;;  %s837_s16 = smov 0   ;;  %s1027_s0 = inlined_call_operand.vmem [shape: bf16[8,8,128], index: 0, kind: input, shape index: {}]   ;;  %s1028_s1 = inlined_call_operand.vmem [shape: bf16[128,128], index: 1, kind: input, shape index: {}]   ;;  %s1029_s2 = inlined_call_operand.vmem [shape: f32[128,128], index: 2, kind: input, shape index: {}]   ;;  %s1030_s3 = inlined_call_operand.vmem [shape: f32[128,128], index: 3, kind: input, shape index: {}]   ;;  %s1031_s4 = inlined_call_operand.vmem [shape: f32[8,128], index: 4, kind: output, shape index: {}]  }
   0x1   :  { %s839_s17 = smov 0  }
   0x2 LB: > { %s23_s18 = sadd.s32 1, %s801_s16  ;;  %p688_p0 = scmp.ge.s32.totalorder %s805_s17, 1  ;;  %s805_s17 = sphi %s839_s17, %s14_s17   ;;  %s801_s16 = sphi %s837_s16, %s1033_s16   ;;  %s797_s15 = sphi %s835_s15, %s1032_s15  }
   0x3   : > { %p24_p1 = scmp.ge.s32.totalorder %s23_s18, 2  ;;  %p180_p2 = scmp.lt.s32.totalorder %s805_s17, 3 }
   0x5   : > { %s1035_s18 = smov (%p24_p1, %s23_s18), 0  ;;  %p181_p3 = pnand %p688_p0, %p180_p2 }
   0x6   : > { %s856_s19 = sshll.u32 (!%p181_p3), %s797_s15, 2  ;;  %p691_p5 = scmp.ne.s32.totalorder (!%p181_p3), %s797_s15, 0 }
   0x7   : > { %184 = sbr.rel (%p181_p3) target bundleno = 812 (0x32c), region = 36  ;;  %p209_p4 = scmp.lt.s32.totalorder (!%p181_p3), %s856_s19, 7 }
   0xc   : > { %s210_s20 = scalar_select %p209_p4, %s856_s19, 7 }
   0xd   : > { %224 = sbr.rel (%p691_p5) target bundleno = 25 (0x19), region = 40 }
   0xe   : > { %s690_s21 = sshll.u32 %s210_s20, 2 }
   0xf   : > { %s863_s24 = scalar_lea.vmem %s1027_s0, %s690_s21 }
  0x12   : > { %v807_v0 = vmov 0.0   ;;  %v808_v1 = vmov -1.0  }
  0x13   : > { %225 = vst [vmem:[#allocation2] sm:$0xff] %v807_v0 }
  0x14   : > { %226 = vst [vmem:[#allocation3] sm:$0xff] %v807_v0 }
  0x15   : > { %227 = vst [vmem:[#allocation4] sm:$0xff] %v807_v0 }
  0x16   : > { %228 = vst [vmem:[#allocation5] sm:$0xff] %v807_v0 }
  0x17   : > { %229 = vst [vmem:[#allocation7] sm:$0xff] %v807_v0 }
  0x18   : > { %230 = vst [vmem:[#allocation6] sm:$0xff] %v808_v1 }
  0x19 PF: > { %v751_v2 = vld [vmem:[%s1028_s1 + $0x38] sm:$0xff]  ;;  %v750_v3 = vld [vmem:[%s1028_s1 + $0x30] sm:$0xff]  ;;  %v749_v4 = vld [vmem:[%s1028_s1 + $0x28] sm:$0xff]  ;;  %s377_s7 = scvt.s32.f32 %s856_s19  ;;  %v809_v53 = vmov 0.0   ;;  %p740_p6 = scmp.ne.s32.totalorder %s797_s15, 1 }
  0x1a   : > { %296 = vmatpush.bf16.msra.mxu0 %v751_v2  ;;  %311 = vmatpush.bf16.msra.mxu1 %v751_v2  ;;  %v748_v5 = vld [vmem:[%s1028_s1 + $0x20] sm:$0xff]  ;;  %v747_v6 = vld [vmem:[%s1028_s1 + $0x18] sm:$0xff]  ;;  %v746_v7 = vld [vmem:[%s1028_s1 + $0x10] sm:$0xff] }
  0x1b   : > { %326 = vmatpush.bf16.msra.mxu2 %v751_v2  ;;  %341 = vmatpush.bf16.msra.mxu3 %v751_v2  ;;  %v745_v8 = vld [vmem:[%s1028_s1 + $0x8] sm:$0xff]  ;;  %v744_v9 = vld [vmem:[%s1028_s1] sm:$0xff]  ;;  %v369_v10 = vld [vmem:[%s1029_s2 + $0x78] sm:$0xff]  ;;  %s949_s8 = smul.f32 0.001, %s377_s7 }
  0x1c   : > { %v368_v11 = vld [vmem:[%s1029_s2 + $0x70] sm:$0xff]  ;;  %v247_v12 = vld [vmem:[%s863_s24] sm:$0xf]  ;;  %v724_v13 = vld [vmem:[%s863_s24 + $0x4] sm:$0xf] }
  0x1d   : > { %v367_v14 = vld [vmem:[%s1029_s2 + $0x68] sm:$0xff]  ;;  %v366_v16 = vld [vmem:[%s1029_s2 + $0x60] sm:$0xff]  ;;  %v365_v17 = vld [vmem:[%s1029_s2 + $0x58] sm:$0xff]  ;;  %v404_v46 = vstv %s949_s8  ;;  %s425_s19 = sadd.f32 0.001, %s949_s8 }
  0x1e   : > { %297 = vmatpush.bf16.msra.mxu0 %v750_v3  ;;  %312 = vmatpush.bf16.msra.mxu1 %v750_v3  ;;  %v725_v15 = vld [vmem:[%s863_s24 + $0x8] sm:$0xf]  ;;  %v364_v18 = vld [vmem:[%s1029_s2 + $0x50] sm:$0xff]  ;;  %v362_v20 = vld [vmem:[%s1029_s2 + $0x40] sm:$0xff]  ;;  %s517_s9 = sadd.f32 0.003, %s949_s8 }
  0x1f   : > { %327 = vmatpush.bf16.msra.mxu2 %v750_v3  ;;  %342 = vmatpush.bf16.msra.mxu3 %v750_v3  ;;  %v363_v19 = vld [vmem:[%s1029_s2 + $0x48] sm:$0xff]  ;;  %v361_v21 = vld [vmem:[%s1029_s2 + $0x38] sm:$0xff]  ;;  %v360_v22 = vld [vmem:[%s1029_s2 + $0x30] sm:$0xff] }
  0x20   : > { %v359_v23 = vld [vmem:[%s1029_s2 + $0x28] sm:$0xff]  ;;  %v358_v24 = vld [vmem:[%s1029_s2 + $0x20] sm:$0xff]  ;;  %v929_v25 = vld [vmem:[#allocation4] sm:$0xff] }
  0x21   : > { %v357_v26 = vld [vmem:[%s1029_s2 + $0x18] sm:$0xff]  ;;  %v356_v28 = vld [vmem:[%s1029_s2 + $0x10] sm:$0xff]  ;;  %v415_v30 = vmul.f32 0.033333335, %v929_v25  ;;  %v355_v31 = vld [vmem:[%s1029_s2 + $0x8] sm:$0xff]  ;;  %v412_v57 = vsub.f32 1.0, %v929_v25 }
  0x22   : > { %298 = vmatpush.bf16.msra.mxu0 %v749_v4  ;;  %313 = vmatpush.bf16.msra.mxu1 %v749_v4  ;;  %v373_v27 = vld [vmem:[#allocation5] sm:$0xff]  ;;  %v354_v32 = vld [vmem:[%s1029_s2] sm:$0xff]  ;;  %v726_v36 = vld [vmem:[%s863_s24 + $0xc] sm:$0xf]  ;;  %s471_s24 = sadd.f32 0.002, %s949_s8 }
  0x23   : > { %328 = vmatpush.bf16.msra.mxu2 %v749_v4  ;;  %343 = vmatpush.bf16.msra.mxu3 %v749_v4  ;;  %v414_v29 = vmul.f32 0.9672161, %v373_v27  ;;  %v370_v41 = vld [vmem:[#allocation2] sm:$0xff]  ;;  %v371_v45 = vld [vmem:[#allocation3] sm:$0xff] }
  0x24   : > { %v374_v42 = vld [vmem:[#allocation6] sm:$0xff]  ;;  %v380_v43 = vmul.f32 0.9048374, %v370_v41  ;;  %v408_v50 = vmul.f32 0.95122945, %v371_v45 }
  0x25   : > { %v944_v33 = vadd.f32 %v415_v30, %v414_v29  ;;  %v403_v44 = vadd.f32 0.005, %v374_v42  ;;  %v421_v0 = vsub.f32 %v404_v46, %v374_v42 }
  0x26   : > { %299 = vmatpush.bf16.msra.mxu0 %v748_v5  ;;  %314 = vmatpush.bf16.msra.mxu1 %v748_v5 }
  0x27   : > { %329 = vmatpush.bf16.msra.mxu2 %v748_v5  ;;  %344 = vmatpush.bf16.msra.mxu3 %v748_v5  ;;  %vm405_vm0 = vcmp.gt.f32.partialorder %v404_v46, %v403_v44  ;;  %v460_v2 = vmul.f32 0.9672161, %v944_v33 }
  0x28   : > { %v728_v54 = vsel %vm405_vm0, 1.0, %v809_v53 }
  0x2a   : > { %300 = vmatpush.bf16.msra.mxu0 %v747_v6  ;;  %315 = vmatpush.bf16.msra.mxu1 %v747_v6 }
  0x2b   : > { %330 = vmatpush.bf16.msra.mxu2 %v747_v6  ;;  %345 = vmatpush.bf16.msra.mxu3 %v747_v6  ;;  %v450_v6 = vstv %s425_s19 }
  0x2e   : > { %301 = vmatpush.bf16.msra.mxu0 %v746_v7  ;;  %316 = vmatpush.bf16.msra.mxu1 %v746_v7 }
  0x2f   : > { %331 = vmatpush.bf16.msra.mxu2 %v746_v7  ;;  %346 = vmatpush.bf16.msra.mxu3 %v746_v7 }
  0x32   : > { %302 = vmatpush.bf16.msra.mxu0 %v745_v8  ;;  %317 = vmatpush.bf16.msra.mxu1 %v745_v8 }
  0x33   : > { %332 = vmatpush.bf16.msra.mxu2 %v745_v8  ;;  %347 = vmatpush.bf16.msra.mxu3 %v745_v8 }
  0x36   : > { %303 = vmatpush.bf16.msra.mxu0 %v744_v9  ;;  %318 = vmatpush.bf16.msra.mxu1 %v744_v9 }
  0x37   : > { %333 = vmatpush.bf16.msra.mxu2 %v744_v9  ;;  %348 = vmatpush.bf16.msra.mxu3 %v744_v9 }
  0x39   : > { %304 = vmatmul.bf16.vlgmr.msra.gmra.mxu0 %v247_v12  ;;  %319 = vmatmul.bf16.vlgmr.msra.gmra.mxu1 %v724_v13 }
  0x3a   : > { %382 = vmatpush.msrb.mxu0 %v369_v10  ;;  %428 = vmatpush.msrb.mxu1 %v369_v10 }
  0x3b   : > { %334 = vmatmul.bf16.vlgmr.msra.gmra.mxu2 %v725_v15  ;;  %520 = vmatpush.msrb.mxu3 %v369_v10 }
  0x3c   : > { %383 = vmatpush.msrb.mxu0 %v368_v11  ;;  %429 = vmatpush.msrb.mxu1 %v368_v11 }
  0x3d   : > { %474 = vmatpush.msrb.mxu2 %v369_v10  ;;  %521 = vmatpush.msrb.mxu3 %v368_v11 }
  0x3e   : > { %384 = vmatpush.msrb.mxu0 %v367_v14  ;;  %430 = vmatpush.msrb.mxu1 %v367_v14 }
  0x3f   : > { %475 = vmatpush.msrb.mxu2 %v368_v11  ;;  %522 = vmatpush.msrb.mxu3 %v367_v14 }
  0x40   : > { %385 = vmatpush.msrb.mxu0 %v366_v16  ;;  %431 = vmatpush.msrb.mxu1 %v366_v16 }
  0x41   : > { %476 = vmatpush.msrb.mxu2 %v367_v14  ;;  %523 = vmatpush.msrb.mxu3 %v366_v16 }
  0x42   : > { %386 = vmatpush.msrb.mxu0 %v365_v17  ;;  %432 = vmatpush.msrb.mxu1 %v365_v17 }
  0x43   : > { %477 = vmatpush.msrb.mxu2 %v366_v16  ;;  %524 = vmatpush.msrb.mxu3 %v365_v17 }
  0x44   : > { %387 = vmatpush.msrb.mxu0 %v364_v18  ;;  %433 = vmatpush.msrb.mxu1 %v364_v18 }
  0x45   : > { %478 = vmatpush.msrb.mxu2 %v365_v17  ;;  %525 = vmatpush.msrb.mxu3 %v364_v18 }
  0x46   : > { %388 = vmatpush.msrb.mxu0 %v363_v19  ;;  %434 = vmatpush.msrb.mxu1 %v363_v19 }
  0x47   : > { %479 = vmatpush.msrb.mxu2 %v364_v18  ;;  %526 = vmatpush.msrb.mxu3 %v363_v19  ;;  %v375_v18 = vld [vmem:[#allocation7] sm:$0xff] }
  0x48   : > { %389 = vmatpush.msrb.mxu0 %v362_v20  ;;  %435 = vmatpush.msrb.mxu1 %v362_v20 }
  0x49   : > { %480 = vmatpush.msrb.mxu2 %v363_v19  ;;  %527 = vmatpush.msrb.mxu3 %v362_v20 }
  0x4a   : > { %390 = vmatpush.msrb.mxu0 %v361_v21  ;;  %436 = vmatpush.msrb.mxu1 %v361_v21 }
  0x4b   : > { %481 = vmatpush.msrb.mxu2 %v362_v20  ;;  %528 = vmatpush.msrb.mxu3 %v361_v21  ;;  %v424_v20 = vmax.f32 %v375_v18, %v944_v33 }
  0x4c   : > { %391 = vmatpush.msrb.mxu0 %v360_v22  ;;  %437 = vmatpush.msrb.mxu1 %v360_v22 }
  0x4d   : > { %482 = vmatpush.msrb.mxu2 %v361_v21  ;;  %529 = vmatpush.msrb.mxu3 %v360_v22 }
  0x4e   : > { %392 = vmatpush.msrb.mxu0 %v359_v23  ;;  %438 = vmatpush.msrb.mxu1 %v359_v23 }
  0x4f   : > { %483 = vmatpush.msrb.mxu2 %v360_v22  ;;  %530 = vmatpush.msrb.mxu3 %v359_v23 }
  0x50   : > { %393 = vmatpush.msrb.mxu0 %v358_v24  ;;  %439 = vmatpush.msrb.mxu1 %v358_v24 }
  0x51   : > { %484 = vmatpush.msrb.mxu2 %v359_v23  ;;  %531 = vmatpush.msrb.mxu3 %v358_v24 }
  0x52   : > { %394 = vmatpush.msrb.mxu0 %v357_v26  ;;  %440 = vmatpush.msrb.mxu1 %v357_v26 }
  0x53   : > { %485 = vmatpush.msrb.mxu2 %v358_v24  ;;  %532 = vmatpush.msrb.mxu3 %v357_v26 }
  0x54   : > { %395 = vmatpush.msrb.mxu0 %v356_v28  ;;  %441 = vmatpush.msrb.mxu1 %v356_v28 }
  0x55   : > { %486 = vmatpush.msrb.mxu2 %v357_v26  ;;  %533 = vmatpush.msrb.mxu3 %v356_v28 }
  0x56   : > { %396 = vmatpush.msrb.mxu0 %v355_v31  ;;  %442 = vmatpush.msrb.mxu1 %v355_v31 }
  0x57   : > { %487 = vmatpush.msrb.mxu2 %v356_v28  ;;  %534 = vmatpush.msrb.mxu3 %v355_v31 }
  0x58   : > { %397 = vmatpush.msrb.mxu0 %v354_v32  ;;  %443 = vmatpush.msrb.mxu1 %v354_v32 }
  0x59   : > { %398 = vmatmul.f32.vlgmr.msrb.gmra.mxu0 %v373_v27  ;;  %444 = vmatmul.f32.vlgmr.msrb.gmra.mxu1 %v944_v33 }
  0x5a   : > { %488 = vmatpush.msrb.mxu2 %v355_v31  ;;  %535 = vmatpush.msrb.mxu3 %v354_v32 }
  0x5b   : > { %349 = vmatmul.bf16.vlgmr.msra.gmra.mxu3 %v726_v36 }
  0x5c   : > { %489 = vmatpush.msrb.mxu2 %v354_v32 }
  0xb6   : > { %v305_v34 = vpop.f32.mrf.mxu0  ;;  %v320_v35 = vpop.f32.mrf.mxu1 }
  0xb7   : > { %v381_v47 = vadd.f32 %v380_v43, %v305_v34 }
  0xbe   : > { %v307_v37 = vpop.f32.mrf.mxu0  ;;  %v322_v38 = vpop.f32.mrf.mxu1 }
  0xbf   : > { %v335_v39 = vpop.f32.mrf.mxu2 }
  0xc7   : > { %v337_v40 = vpop.f32.mrf.mxu2 }
  0xd6   : > { %v399_v48 = vpop.f32.mrf.mxu0  ;;  %v445_v55 = vpop.f32.mrf.mxu1 }
  0xd7   : > { %v402_v49 = vadd.f32 %v399_v48, %v381_v47 }
  0xd9   : > { %v409_v51 = vmul.f32 0.048770577, %v402_v49  ;;  %v426_v52 = vmul.f32 0.9048374, %v402_v49 }
  0xdb   : > { %v410_v56 = vadd.f32 %v409_v51, %v408_v50  ;;  %v427_v58 = vadd.f32 %v426_v52, %v320_v35  ;;  %v496_v35 = vstv %s471_s24 }
  0xdd   : > { %v411_v59 = vmul.f32 %v728_v54, %v410_v56  ;;  %v448_v60 = vadd.f32 %v445_v55, %v427_v58 }
  0xde   : > { %v350_v29 = vpop.f32.mrf.mxu3 }
  0xdf   : > { %v413_v61 = vmul.f32 %v412_v57, %v411_v59  ;;  %v472_v62 = vmul.f32 0.9048374, %v448_v60  ;;  %v455_v11 = vmul.f32 0.048770577, %v448_v60  ;;  %v542_v59 = vstv %s517_s9 }
  0xe1   : > { %v729_v63 = vadd.f32 -1.0, %v413_v61  ;;  %v473_v1 = vadd.f32 %v472_v62, %v335_v39  ;;  %v454_v8 = vmul.f32 0.95122945, %v413_v61 }
  0xe3   : > { %vm418_vm1 = vcmp.gt.f32.partialorder %v729_v63, 0.0  ;;  %v456_v13 = vadd.f32 %v455_v11, %v454_v8 }
  0xe4   : > { %v730_v3 = vsel %vm418_vm1, 1.0, %v809_v53 }
  0xe5   : > { %v422_v4 = vmul.f32 %v730_v3, %v421_v0  ;;  %v461_v5 = vmul.f32 0.033333335, %v730_v3  ;;  %v458_v16 = vsub.f32 1.0, %v730_v3 }
  0xe6   : > { %v352_v30 = vpop.f32.mrf.mxu3 }
  0xe7   : > { %v423_v7 = vadd.f32 %v422_v4, %v374_v42  ;;  %v462_v9 = vadd.f32 %v461_v5, %v460_v2 }
  0xe9   : > { %v449_v10 = vadd.f32 0.005, %v423_v7  ;;  %v467_v12 = vsub.f32 %v450_v6, %v423_v7  ;;  %490 = vmatmul.f32.vlgmr.msrb.gmra.mxu2 %v462_v9  ;;  %v506_v23 = vmul.f32 0.9672161, %v462_v9  ;;  %v470_v25 = vmax.f32 %v424_v20, %v462_v9 }
  0xeb   : > { %vm451_vm2 = vcmp.gt.f32.partialorder %v450_v6, %v449_v10 }
  0xec   : > { %v731_v14 = vsel %vm451_vm2, 1.0, %v809_v53 }
  0xed   : > { %v457_v15 = vmul.f32 %v731_v14, %v456_v13 }
  0xef   : > { %v459_v17 = vmul.f32 %v458_v16, %v457_v15 }
  0xf1   : > { %v732_v19 = vadd.f32 -1.0, %v459_v17  ;;  %v500_v33 = vmul.f32 0.95122945, %v459_v17 }
  0xf3   : > { %vm464_vm3 = vcmp.gt.f32.partialorder %v732_v19, 0.0 }
  0xf4   : > { %v733_v21 = vsel %vm464_vm3, 1.0, %v809_v53 }
  0xf5   : > { %v468_v22 = vmul.f32 %v733_v21, %v467_v12  ;;  %v507_v24 = vmul.f32 0.033333335, %v733_v21  ;;  %v504_v40 = vsub.f32 1.0, %v733_v21 }
  0xf7   : > { %v469_v26 = vadd.f32 %v468_v22, %v423_v7  ;;  %v508_v27 = vadd.f32 %v507_v24, %v506_v23 }
  0xf9   : > { %v516_v28 = vmax.f32 %v470_v25, %v508_v27  ;;  %536 = vmatmul.f32.vlgmr.msrb.gmra.mxu3 %v508_v27  ;;  %v495_v31 = vadd.f32 0.005, %v469_v26  ;;  %v513_v44 = vsub.f32 %v496_v35, %v469_v26  ;;  %v552_v46 = vmul.f32 0.9672161, %v508_v27 }
  0xfb   : > { %vm497_vm4 = vcmp.gt.f32.partialorder %v496_v35, %v495_v31 }
  0xfc   : > { %v734_v38 = vsel %vm497_vm4, 1.0, %v809_v53 }
 0x16c   : > { %v491_v32 = vpop.f32.mrf.mxu2 }
 0x16d   : > { %v494_v34 = vadd.f32 %v491_v32, %v473_v1 }
 0x16f   : > { %v501_v36 = vmul.f32 0.048770577, %v494_v34  ;;  %v518_v42 = vmul.f32 0.9048374, %v494_v34 }
 0x171   : > { %v502_v37 = vadd.f32 %v501_v36, %v500_v33  ;;  %v519_v48 = vadd.f32 %v518_v42, %v350_v29 }
 0x173   : > { %v503_v39 = vmul.f32 %v734_v38, %v502_v37 }
 0x175   : > { %v505_v41 = vmul.f32 %v504_v40, %v503_v39 }
 0x177   : > { %v735_v43 = vadd.f32 -1.0, %v505_v41  ;;  %v546_v55 = vmul.f32 0.95122945, %v505_v41 }
 0x179   : > { %vm510_vm5 = vcmp.gt.f32.partialorder %v735_v43, 0.0 }
 0x17a   : > { %v736_v45 = vsel %vm510_vm5, 1.0, %v809_v53 }
 0x17b   : > { %v514_v47 = vmul.f32 %v736_v45, %v513_v44  ;;  %v553_v49 = vmul.f32 0.033333335, %v736_v45  ;;  %v550_v63 = vsub.f32 1.0, %v736_v45 }
 0x17c   : > { %v537_v50 = vpop.f32.mrf.mxu3 }
 0x17d   : > { %v515_v51 = vadd.f32 %v514_v47, %v469_v26  ;;  %v540_v52 = vadd.f32 %v537_v50, %v519_v48  ;;  %v554_v54 = vadd.f32 %v553_v49, %v552_v46 }
 0x17f   : > { %v541_v56 = vadd.f32 0.005, %v515_v51  ;;  %v547_v57 = vmul.f32 0.048770577, %v540_v52  ;;  %v562_v58 = vmax.f32 %v516_v28, %v554_v54  ;;  %563 = vst [vmem:[#allocation2] sm:$0xff] %v540_v52  ;;  %v559_v2 = vsub.f32 %v542_v59, %v515_v51 }
 0x180   : > { %566 = vst [vmem:[#allocation5] sm:$0xff] %v554_v54 }
 0x181   : > { %vm543_vm6 = vcmp.gt.f32.partialorder %v542_v59, %v541_v56  ;;  %v548_v60 = vadd.f32 %v547_v57, %v546_v55  ;;  %568 = vst [vmem:[#allocation7] sm:$0xff] %v562_v58 }
 0x182   : > { %v737_v61 = vsel %vm543_vm6, 1.0, %v809_v53 }
 0x183   : > { %v549_v62 = vmul.f32 %v737_v61, %v548_v60 }
 0x185   : > { %v551_v0 = vmul.f32 %v550_v63, %v549_v62 }
 0x187   : > { %v738_v1 = vadd.f32 -1.0, %v551_v0  ;;  %564 = vst [vmem:[#allocation3] sm:$0xff] %v551_v0 }
 0x189   : > { %vm556_vm7 = vcmp.gt.f32.partialorder %v738_v1, 0.0 }
 0x18a   : > { %v739_v3 = vsel %vm556_vm7, 1.0, %v809_v53 }
 0x18b   : > { %v560_v4 = vmul.f32 %v739_v3, %v559_v2  ;;  %565 = vst [vmem:[#allocation4] sm:$0xff] %v739_v3  ;;  %572 = sbr.rel (%p740_p6) target bundleno = 812 (0x32c), region = 44 }
 0x18d   : > { %v561_v5 = vadd.f32 %v560_v4, %v515_v51 }
 0x18f   : > { %567 = vst [vmem:[#allocation6] sm:$0xff] %v561_v5 }
 0x190   : > { %v588_v6 = vld [vmem:[%s1030_s3 + $0x78] sm:$0xff]  ;;  %v587_v7 = vld [vmem:[%s1030_s3 + $0x70] sm:$0xff]  ;;  %v586_v53 = vld [vmem:[%s1030_s3 + $0x68] sm:$0xff]  ;;  %v609_v21 = vlaneseq }
 0x191   : > { %589 = vmatpush.msra.mxu0 %v588_v6  ;;  %v585_v8 = vld [vmem:[%s1030_s3 + $0x60] sm:$0xff]  ;;  %v584_v9 = vld [vmem:[%s1030_s3 + $0x58] sm:$0xff]  ;;  %v583_v10 = vld [vmem:[%s1030_s3 + $0x50] sm:$0xff] }
 0x192   : > { %v582_v11 = vld [vmem:[%s1030_s3 + $0x48] sm:$0xff]  ;;  %v581_v12 = vld [vmem:[%s1030_s3 + $0x40] sm:$0xff]  ;;  %v580_v13 = vld [vmem:[%s1030_s3 + $0x38] sm:$0xff]  ;;  %v610_v22 = vand.u32 127, %v609_v21 }
 0x193   : > { %590 = vmatpush.msra.mxu0 %v587_v7  ;;  %v579_v14 = vld [vmem:[%s1030_s3 + $0x30] sm:$0xff]  ;;  %v578_v15 = vld [vmem:[%s1030_s3 + $0x28] sm:$0xff]  ;;  %v577_v16 = vld [vmem:[%s1030_s3 + $0x20] sm:$0xff] }
 0x194   : > { %v576_v17 = vld [vmem:[%s1030_s3 + $0x18] sm:$0xff]  ;;  %v575_v18 = vld [vmem:[%s1030_s3 + $0x10] sm:$0xff]  ;;  %v574_v19 = vld [vmem:[%s1030_s3 + $0x8] sm:$0xff]  ;;  %vm611_vm8 = vcmp.lt.s32.totalorder %v610_v22, 10 }
 0x195   : > { %591 = vmatpush.msra.mxu0 %v586_v53  ;;  %v573_v20 = vld [vmem:[%s1030_s3] sm:$0xff] }
 0x197   : > { %592 = vmatpush.msra.mxu0 %v585_v8 }
 0x199   : > { %593 = vmatpush.msra.mxu0 %v584_v9 }
 0x19b   : > { %594 = vmatpush.msra.mxu0 %v583_v10 }
 0x19d   : > { %595 = vmatpush.msra.mxu0 %v582_v11 }
 0x19f   : > { %596 = vmatpush.msra.mxu0 %v581_v12 }
 0x1a1   : > { %597 = vmatpush.msra.mxu0 %v580_v13 }
 0x1a3   : > { %598 = vmatpush.msra.mxu0 %v579_v14 }
 0x1a5   : > { %599 = vmatpush.msra.mxu0 %v578_v15 }
 0x1a7   : > { %600 = vmatpush.msra.mxu0 %v577_v16 }
 0x1a9   : > { %601 = vmatpush.msra.mxu0 %v576_v17 }
 0x1ab   : > { %602 = vmatpush.msra.mxu0 %v575_v18 }
 0x1ad   : > { %603 = vmatpush.msra.mxu0 %v574_v19 }
 0x1af   : > { %604 = vmatpush.msra.mxu0 %v573_v20 }
 0x1b0   : > { %605 = vmatmul.f32.vlgmr.msra.gmra.mxu0 %v562_v58 }
 0x22d   : > { %v606_v23 = vpop.f32.mrf.mxu0 }
 0x22e   : > { %v612_v24 = vsel %vm611_vm8, %v606_v23, -1e+30 }
 0x22f   : > { %613 = vmax.xlane.f32.xlu0 %v612_v24 }
 0x2a2   : > { %v614_v25 = vpop.xlane.xlu0 %613 }
 0x2a3   : > { %v615_v26 = vsub.f32 %v612_v24, %v614_v25 }
 0x2a5   : > { %v616_v27 = vmul.f32 1.442695, %v615_v26 }
 0x2a7   : > { %779 = vpow2.f32 %v616_v27 }
 0x2ad   : > { %v780_v28 = vpop.eup %779 }
 0x2ae   : > { %618 = vadd.xlane.f32.xlu0 %v780_v28 }
 0x321   : > { %v619_v29 = vpop.xlane.xlu0 %618 }
 0x322   : > { %781 = vrcp.f32 %v619_v29 }
 0x328   : > { %v782_v30 = vpop.eup %781 }
 0x329   : > { %v621_v31 = vmul.f32 %v782_v30, %v780_v28 }
 0x32b   : > { %622 = vst [vmem:[%s1031_s4] sm:$0xff] %v621_v31 }
 0x32c PF: > { %s14_s17 = sadd.s32 1, %s805_s17   ;;  %s1032_s15 = smov %s801_s16 }
 0x32d   : > { %p11_p7 = scmp.ge.s32.totalorder %s14_s17, 4   ;;  %s1033_s16 = smov %s1035_s18 }
 0x32f   :  { %13 = sbr.rel (!%p11_p7) target bundleno = 2 (0x2), region = 77 }

</bundles_post_ra>
